<compile_context>
chip_gen: v7x
topology: tpu7x:2x2x1
jax: 0.10.0
libtpu: 0.0.40
codegen_flags: <defaults>
</compile_context>

<pallas_src>
import functools

import jax
import jax.numpy as jnp
import numpy as np
from jax import lax
from jax.experimental import pallas as pl
from jax.experimental.pallas import tpu as pltpu

ALPHA = 0.2      # LeakyReLU negative slope
BN_EPS = 1e-5


def _round_up(x, m):
    return (x + m - 1) // m * m


# ---------------------------------------------------------------------------
# Pass 1: in-kernel 3x3 patch build (9 shifted matmuls) + global BN sum/sumsq
# ---------------------------------------------------------------------------
def conv_stats_kernel(xm_ref, xh_ref, w_ref, b_ref, mask_ref,
                      y_ref, s1_ref, s2_ref, *, kh, kw, w_in):
    # xm_ref:   (1, Cin, TM)     bf16  main flattened-spatial tile
    # xh_ref:   (1, Cin, EXTRA)  bf16  right halo (next EXTRA lanes of x_flat)
    # w_ref:    (KH*KW, Cout, Cin) bf16  per-tap weights (resident across grid)
    # b_ref:    (Cout, 1) f32
    # mask_ref: (1, TM)  f32   1.0 where this flat position is a valid output
    # y_ref:    (1, Cout, TM) bf16   conv output tile (lane-dense)
    # s1/s2:    (1, 1, Cout, 1) f32  per-(batch, tile) partial BN sums
    tm = y_ref.shape[-1]
    cout = y_ref.shape[-2]

    # Contiguous window [m*TM, m*TM + TM + EXTRA) of the flattened input.
    x_win = jnp.concatenate([xm_ref[0], xh_ref[0]], axis=-1)   # (Cin, TM+EXTRA)

    # 9 shifted (Cout,Cin) x (Cin,TM) matmuls, f32 accumulation on the MXU.
    acc = jnp.zeros((cout, tm), jnp.float32)
    for t in range(kh * kw):
        off = (t // kw) * w_in + (t % kw)                      # ki*W + kj
        acc = acc + jnp.dot(w_ref[t], x_win[:, off:off + tm],
                            preferred_element_type=jnp.float32)
    y = acc + b_ref[...]                                       # (Cout, TM) f32
    y_ref[0] = y.astype(y_ref.dtype)                           # bf16 intermediate

    # Mask invalid lanes out of the (f32) batch statistics.
    ym = y * mask_ref[...]
    s1_ref[0, 0] = jnp.sum(ym, axis=1, keepdims=True)
    s2_ref[0, 0] = jnp.sum(ym * ym, axis=1, keepdims=True)


# ---------------------------------------------------------------------------
# Pass 2: BN affine apply + LeakyReLU (in place over y via aliasing)
# ---------------------------------------------------------------------------
def bn_lrelu_kernel(y_ref, scale_ref, shift_ref, o_ref, *, alpha):
    z = y_ref[0].astype(jnp.float32) * scale_ref[...] + shift_ref[...]
    o_ref[0] = jnp.where(z > 0, z, alpha * z).astype(o_ref.dtype)


# ---------------------------------------------------------------------------
# Wrapper
# ---------------------------------------------------------------------------
def conv_block_forward(x_nchw, w_oihw, bias, gamma, beta, stride,
                       compute_dtype=jnp.bfloat16):
    """ConvBlock forward. x_nchw: (N, Cin, H, W) -> (N, Cout, OH, OW) f32."""
    N, Cin, H, W = x_nchw.shape
    Cout, _, KH, KW = w_oihw.shape
    OH = (H - KH) // stride + 1
    OW = (W - KW) // stride + 1

    # Dense-grid formulation: compute the conv at every flat position
    # t = row*W + col of the input grid (rows 0..Hrows-1); tap (ki,kj) reads
    # x_flat[t + ki*W + kj].  Valid outputs are row%stride==0, row<OH*stride,
    # col%stride==0, col<OW*stride; the rest are garbage lanes that are masked
    # out of the BN stats and sliced off at the end.
    Hrows = (OH - 1) * stride + 1
    L_out = Hrows * W
    EXTRA = _round_up((KH - 1) * W + (KW - 1), 128)        # halo for tap overlap
    TM_cap = max(EXTRA, (2048 // EXTRA) * EXTRA)
    TM = min(_round_up(L_out, EXTRA), TM_cap)              # lane-dense tile size
    L_out_pad = _round_up(L_out, TM)
    L_in_pad = L_out_pad + EXTRA
    n_m = L_out_pad // TM
    grid = (N, n_m)

    # --- minimal glue (1x traffic, bf16): flatten spatial, zero-pad, cast ----
    x_flat = x_nchw.reshape(N, Cin, H * W).astype(compute_dtype)
    x_flat = jnp.pad(x_flat, ((0, 0), (0, 0), (0, L_in_pad - H * W)))

    # per-tap weights (KH*KW, Cout, Cin), bf16; bias f32
    w_taps = jnp.transpose(w_oihw, (2, 3, 0, 1)).reshape(KH * KW, Cout, Cin)
    w_taps = w_taps.astype(compute_dtype)
    b2 = bias.reshape(Cout, 1).astype(jnp.float32)

    # 0/1 validity mask over the padded flat output grid (tiny, built once).
    t = jnp.arange(L_out_pad, dtype=jnp.int32)
    row, col = t // W, t % W
    valid = ((row % stride == 0) & (row < OH * stride) &
             (col % stride == 0) & (col < OW * stride))
    mask = valid.astype(jnp.float32).reshape(1, L_out_pad)

    # ---------------- pass 1: conv + BN partial sums -------------------------
    kern = functools.partial(conv_stats_kernel, kh=KH, kw=KW, w_in=W)
    y, s1, s2 = pl.pallas_call(
        kern,
        out_shape=(
            jax.ShapeDtypeStruct((N, Cout, L_out_pad), compute_dtype),
            jax.ShapeDtypeStruct((N, n_m, Cout, 1), jnp.float32),
            jax.ShapeDtypeStruct((N, n_m, Cout, 1), jnp.float32),
        ),
        grid_spec=pltpu.PrefetchScalarGridSpec(
            num_scalar_prefetch=0,
            grid=grid,
            in_specs=[
                pl.BlockSpec((1, Cin, TM), lambda n, m: (n, 0, m)),
                pl.BlockSpec((1, Cin, EXTRA),
                             lambda n, m: (n, 0, (m + 1) * (TM // EXTRA))),
                pl.BlockSpec((KH * KW, Cout, Cin), lambda n, m: (0, 0, 0)),
                pl.BlockSpec((Cout, 1), lambda n, m: (0, 0)),
                pl.BlockSpec((1, TM), lambda n, m: (0, m)),
            ],
            out_specs=[
                pl.BlockSpec((1, Cout, TM), lambda n, m: (n, 0, m)),
                pl.BlockSpec((1, 1, Cout, 1), lambda n, m: (n, m, 0, 0)),
                pl.BlockSpec((1, 1, Cout, 1), lambda n, m: (n, m, 0, 0)),
            ],
        ),
        compiler_params=pltpu.CompilerParams(
            dimension_semantics=("parallel", "parallel"),
            vmem_limit_bytes=48 * 1024 * 1024,
        ),
    )(x_flat, x_flat, w_taps, b2, mask)

    # --- tiny (Cout,) stat fold: mean/var -> scale/shift ---------------------
    count = jnp.float32(N * OH * OW)
    total = jnp.sum(s1, axis=(0, 1))[:, 0]                  # (Cout,)
    total_sq = jnp.sum(s2, axis=(0, 1))[:, 0]               # (Cout,)
    mean = total / count
    var = jnp.maximum(total_sq / count - mean * mean, 0.0)  # biased (train mode)
    inv_std = lax.rsqrt(var + BN_EPS)
    g = gamma.astype(jnp.float32)
    scale = (g * inv_std).reshape(Cout, 1)
    shift = (beta.astype(jnp.float32) - mean * g * inv_std).reshape(Cout, 1)

    # ---------------- pass 2: BN apply + LeakyReLU (in place) ----------------
    out_lin = pl.pallas_call(
        functools.partial(bn_lrelu_kernel, alpha=ALPHA),
        out_shape=jax.ShapeDtypeStruct((N, Cout, L_out_pad), compute_dtype),
        grid_spec=pltpu.PrefetchScalarGridSpec(
            num_scalar_prefetch=0,
            grid=grid,
            in_specs=[
                pl.BlockSpec((1, Cout, TM), lambda n, m: (n, 0, m)),
                pl.BlockSpec((Cout, 1), lambda n, m: (0, 0)),
                pl.BlockSpec((Cout, 1), lambda n, m: (0, 0)),
            ],
            out_specs=pl.BlockSpec((1, Cout, TM), lambda n, m: (n, 0, m)),
        ),
        input_output_aliases={0: 0},
        compiler_params=pltpu.CompilerParams(
            dimension_semantics=("parallel", "parallel"),
            vmem_limit_bytes=48 * 1024 * 1024,
        ),
    )(y, scale, shift)

    # Extract valid (strided) positions and restore NCHW float32.
    out = out_lin[:, :, :L_out].reshape(N, Cout, Hrows, W)
    out = out[:, :, ::stride, ::stride][:, :, :OH, :OW]
    return out.astype(jnp.float32)


# ---------------------------------------------------------------------------
# Pure-JAX reference mirroring the PyTorch module (train-mode BN)
# ---------------------------------------------------------------------------
def conv_block_reference(x_nchw, w_oihw, bias, gamma, beta, stride):
    y = lax.conv_general_dilated(
        x_nchw, w_oihw, window_strides=(stride, stride), padding="VALID",
        dimension_numbers=("NCHW", "OIHW", "NCHW"))
    y = y + bias.reshape(1, -1, 1, 1)
    mean = jnp.mean(y, axis=(0, 2, 3), keepdims=True)
    var = jnp.mean((y - mean) ** 2, axis=(0, 2, 3), keepdims=True)
    y = (y - mean) * lax.rsqrt(var + BN_EPS)
    y = y * gamma.reshape(1, -1, 1, 1) + beta.reshape(1, -1, 1, 1)
    return jnp.where(y > 0, y, ALPHA * y)


if __name__ == "__main__":
    # Small shapes consistent with the module: batch=2, Cin=4, spatial=16x16,
    # Cout=8, kernel 3x3.
    N, Cin, H, W = 2, 4, 16, 16
    Cout, KH, KW = 8, 3, 3

    key = jax.random.PRNGKey(0)
    kx, kw, kb, kg, kbeta = jax.random.split(key, 5)

    x = jax.random.normal(kx, (N, Cin, H, W), dtype=jnp.float32)

    # Deterministic parameter init (PyTorch-like uniform bounds for conv).
    fan_in = Cin * KH * KW
    bound = 1.0 / np.sqrt(fan_in)
    w = jax.random.uniform(kw, (Cout, Cin, KH, KW), minval=-bound, maxval=bound,
                           dtype=jnp.float32)
    b = jax.random.uniform(kb, (Cout,), minval=-bound, maxval=bound,
                           dtype=jnp.float32)
    gamma = jax.random.uniform(kg, (Cout,), minval=0.5, maxval=1.5,
                               dtype=jnp.float32)
    beta = jax.random.uniform(kbeta, (Cout,), minval=-0.5, maxval=0.5,
                              dtype=jnp.float32)

    for stride in (1, 2):
        fwd = jax.jit(functools.partial(conv_block_forward, stride=stride))
        out = jax.block_until_ready(fwd(x, w, b, gamma, beta))
        ref = jax.block_until_ready(
            conv_block_reference(x, w, b, gamma, beta, stride))
        oh = (H - KH) // stride + 1
        ow = (W - KW) // stride + 1
        assert out.shape == (N, Cout, oh, ow)
        # bf16 MXU operands / bf16 y intermediate with f32 stats and accumulation.
        np.testing.assert_allclose(np.asarray(out), np.asarray(ref),
                                   rtol=2e-2, atol=2e-2)

    print("KERNEL_OK")
</pallas_src>

<mosaic_0001>
module attributes {stable_mosaic.version = 11 : i64} {
  func.func @conv_stats_kernel(%arg0: i32, %arg1: i32, %arg2: memref<1x4x256xbf16, #tpu.memory_space<vmem>>, %arg3: memref<1x4x128xbf16, #tpu.memory_space<vmem>>, %arg4: memref<9x8x4xbf16, #tpu.memory_space<vmem>>, %arg5: memref<8x1xf32, #tpu.memory_space<vmem>>, %arg6: memref<1x256xf32, #tpu.memory_space<vmem>>, %arg7: memref<1x8x256xbf16, #tpu.memory_space<vmem>>, %arg8: memref<1x1x8x1xf32, #tpu.memory_space<vmem>>, %arg9: memref<1x1x8x1xf32, #tpu.memory_space<vmem>>) attributes {dimension_semantics = [#tpu.dimension_semantics<parallel>, #tpu.dimension_semantics<parallel>], iteration_bounds = array<i64: 2, 1>, scalar_prefetch = 0 : i64, scratch_operands = 0 : i64, tpu.core_type = #tpu.core_type<tc>, window_params = [{transform_indices = @transform_0, window_bounds = array<i64: 1, 4, 256>}, {transform_indices = @transform_1, window_bounds = array<i64: 1, 4, 128>}, {pipeline_mode = #tpu.pipeline_mode<synchronous>, transform_indices = @transform_2, window_bounds = array<i64: 9, 8, 4>}, {pipeline_mode = #tpu.pipeline_mode<synchronous>, transform_indices = @transform_3, window_bounds = array<i64: 8, 1>}, {transform_indices = @transform_4, window_bounds = array<i64: 1, 256>}, {transform_indices = @transform_5, window_bounds = array<i64: 1, 8, 256>}, {transform_indices = @transform_6, window_bounds = array<i64: 1, 1, 8, 1>}, {transform_indices = @transform_7, window_bounds = array<i64: 1, 1, 8, 1>}]} {
    %c0 = arith.constant 0 : index
    %c0_0 = arith.constant 0 : index
    %c0_1 = arith.constant 0 : index
    %0 = vector.load %arg2[%c0, %c0_0, %c0_1] : memref<1x4x256xbf16, #tpu.memory_space<vmem>>, vector<1x4x256xbf16>
    %1 = vector.shape_cast %0 : vector<1x4x256xbf16> to vector<4x256xbf16>
    %c0_2 = arith.constant 0 : index
    %c0_3 = arith.constant 0 : index
    %c0_4 = arith.constant 0 : index
    %2 = vector.load %arg3[%c0_2, %c0_3, %c0_4] : memref<1x4x128xbf16, #tpu.memory_space<vmem>>, vector<1x4x128xbf16>
    %3 = vector.shape_cast %2 : vector<1x4x128xbf16> to vector<4x128xbf16>
    %4 = tpu.concatenate %1, %3 in 1 : vector<4x256xbf16>, vector<4x128xbf16> -> vector<4x384xbf16>
    %cst = arith.constant 0.000000e+00 : f32
    %5 = vector.broadcast %cst : f32 to vector<8x256xf32>
    %c0_5 = arith.constant 0 : index
    %c0_6 = arith.constant 0 : index
    %c0_7 = arith.constant 0 : index
    %6 = vector.load %arg4[%c0_5, %c0_6, %c0_7] : memref<9x8x4xbf16, #tpu.memory_space<vmem>>, vector<1x8x4xbf16>
    %7 = vector.shape_cast %6 : vector<1x8x4xbf16> to vector<8x4xbf16>
    %8 = vector.extract_strided_slice %4 {offsets = [0, 0], sizes = [4, 256], strides = [1, 1]} : vector<4x384xbf16> to vector<4x256xbf16>
    %cst_8 = arith.constant dense<0.000000e+00> : vector<8x256xf32>
    %9 = tpu.matmul %7, %8, %cst_8 {dimension_numbers = #tpu.dot_dimension_numbers<[1], [0], [0], [1], [0, 0, 1, 1], [], []>} : vector<8x4xbf16>, vector<4x256xbf16>, vector<8x256xf32> -> vector<8x256xf32>
    %10 = arith.addf %5, %9 : vector<8x256xf32>
    %c1 = arith.constant 1 : index
    %c0_9 = arith.constant 0 : index
    %c0_10 = arith.constant 0 : index
    %11 = vector.load %arg4[%c1, %c0_9, %c0_10] : memref<9x8x4xbf16, #tpu.memory_space<vmem>>, vector<1x8x4xbf16>
    %12 = vector.shape_cast %11 : vector<1x8x4xbf16> to vector<8x4xbf16>
    %13 = vector.extract_strided_slice %4 {offsets = [0, 1], sizes = [4, 256], strides = [1, 1]} : vector<4x384xbf16> to vector<4x256xbf16>
    %cst_11 = arith.constant dense<0.000000e+00> : vector<8x256xf32>
    %14 = tpu.matmul %12, %13, %cst_11 {dimension_numbers = #tpu.dot_dimension_numbers<[1], [0], [0], [1], [0, 0, 1, 1], [], []>} : vector<8x4xbf16>, vector<4x256xbf16>, vector<8x256xf32> -> vector<8x256xf32>
    %15 = arith.addf %10, %14 : vector<8x256xf32>
    %c2 = arith.constant 2 : index
    %c0_12 = arith.constant 0 : index
    %c0_13 = arith.constant 0 : index
    %16 = vector.load %arg4[%c2, %c0_12, %c0_13] : memref<9x8x4xbf16, #tpu.memory_space<vmem>>, vector<1x8x4xbf16>
    %17 = vector.shape_cast %16 : vector<1x8x4xbf16> to vector<8x4xbf16>
    %18 = vector.extract_strided_slice %4 {offsets = [0, 2], sizes = [4, 256], strides = [1, 1]} : vector<4x384xbf16> to vector<4x256xbf16>
    %cst_14 = arith.constant dense<0.000000e+00> : vector<8x256xf32>
    %19 = tpu.matmul %17, %18, %cst_14 {dimension_numbers = #tpu.dot_dimension_numbers<[1], [0], [0], [1], [0, 0, 1, 1], [], []>} : vector<8x4xbf16>, vector<4x256xbf16>, vector<8x256xf32> -> vector<8x256xf32>
    %20 = arith.addf %15, %19 : vector<8x256xf32>
    %c3 = arith.constant 3 : index
    %c0_15 = arith.constant 0 : index
    %c0_16 = arith.constant 0 : index
    %21 = vector.load %arg4[%c3, %c0_15, %c0_16] : memref<9x8x4xbf16, #tpu.memory_space<vmem>>, vector<1x8x4xbf16>
    %22 = vector.shape_cast %21 : vector<1x8x4xbf16> to vector<8x4xbf16>
    %23 = vector.extract_strided_slice %4 {offsets = [0, 16], sizes = [4, 256], strides = [1, 1]} : vector<4x384xbf16> to vector<4x256xbf16>
    %cst_17 = arith.constant dense<0.000000e+00> : vector<8x256xf32>
    %24 = tpu.matmul %22, %23, %cst_17 {dimension_numbers = #tpu.dot_dimension_numbers<[1], [0], [0], [1], [0, 0, 1, 1], [], []>} : vector<8x4xbf16>, vector<4x256xbf16>, vector<8x256xf32> -> vector<8x256xf32>
    %25 = arith.addf %20, %24 : vector<8x256xf32>
    %c4 = arith.constant 4 : index
    %c0_18 = arith.constant 0 : index
    %c0_19 = arith.constant 0 : index
    %26 = vector.load %arg4[%c4, %c0_18, %c0_19] : memref<9x8x4xbf16, #tpu.memory_space<vmem>>, vector<1x8x4xbf16>
    %27 = vector.shape_cast %26 : vector<1x8x4xbf16> to vector<8x4xbf16>
    %28 = vector.extract_strided_slice %4 {offsets = [0, 17], sizes = [4, 256], strides = [1, 1]} : vector<4x384xbf16> to vector<4x256xbf16>
    %cst_20 = arith.constant dense<0.000000e+00> : vector<8x256xf32>
    %29 = tpu.matmul %27, %28, %cst_20 {dimension_numbers = #tpu.dot_dimension_numbers<[1], [0], [0], [1], [0, 0, 1, 1], [], []>} : vector<8x4xbf16>, vector<4x256xbf16>, vector<8x256xf32> -> vector<8x256xf32>
    %30 = arith.addf %25, %29 : vector<8x256xf32>
    %c5 = arith.constant 5 : index
    %c0_21 = arith.constant 0 : index
    %c0_22 = arith.constant 0 : index
    %31 = vector.load %arg4[%c5, %c0_21, %c0_22] : memref<9x8x4xbf16, #tpu.memory_space<vmem>>, vector<1x8x4xbf16>
    %32 = vector.shape_cast %31 : vector<1x8x4xbf16> to vector<8x4xbf16>
    %33 = vector.extract_strided_slice %4 {offsets = [0, 18], sizes = [4, 256], strides = [1, 1]} : vector<4x384xbf16> to vector<4x256xbf16>
    %cst_23 = arith.constant dense<0.000000e+00> : vector<8x256xf32>
    %34 = tpu.matmul %32, %33, %cst_23 {dimension_numbers = #tpu.dot_dimension_numbers<[1], [0], [0], [1], [0, 0, 1, 1], [], []>} : vector<8x4xbf16>, vector<4x256xbf16>, vector<8x256xf32> -> vector<8x256xf32>
    %35 = arith.addf %30, %34 : vector<8x256xf32>
    %c6 = arith.constant 6 : index
    %c0_24 = arith.constant 0 : index
    %c0_25 = arith.constant 0 : index
    %36 = vector.load %arg4[%c6, %c0_24, %c0_25] : memref<9x8x4xbf16, #tpu.memory_space<vmem>>, vector<1x8x4xbf16>
    %37 = vector.shape_cast %36 : vector<1x8x4xbf16> to vector<8x4xbf16>
    %38 = vector.extract_strided_slice %4 {offsets = [0, 32], sizes = [4, 256], strides = [1, 1]} : vector<4x384xbf16> to vector<4x256xbf16>
    %cst_26 = arith.constant dense<0.000000e+00> : vector<8x256xf32>
    %39 = tpu.matmul %37, %38, %cst_26 {dimension_numbers = #tpu.dot_dimension_numbers<[1], [0], [0], [1], [0, 0, 1, 1], [], []>} : vector<8x4xbf16>, vector<4x256xbf16>, vector<8x256xf32> -> vector<8x256xf32>
    %40 = arith.addf %35, %39 : vector<8x256xf32>
    %c7 = arith.constant 7 : index
    %c0_27 = arith.constant 0 : index
    %c0_28 = arith.constant 0 : index
    %41 = vector.load %arg4[%c7, %c0_27, %c0_28] : memref<9x8x4xbf16, #tpu.memory_space<vmem>>, vector<1x8x4xbf16>
    %42 = vector.shape_cast %41 : vector<1x8x4xbf16> to vector<8x4xbf16>
    %43 = vector.extract_strided_slice %4 {offsets = [0, 33], sizes = [4, 256], strides = [1, 1]} : vector<4x384xbf16> to vector<4x256xbf16>
    %cst_29 = arith.constant dense<0.000000e+00> : vector<8x256xf32>
    %44 = tpu.matmul %42, %43, %cst_29 {dimension_numbers = #tpu.dot_dimension_numbers<[1], [0], [0], [1], [0, 0, 1, 1], [], []>} : vector<8x4xbf16>, vector<4x256xbf16>, vector<8x256xf32> -> vector<8x256xf32>
    %45 = arith.addf %40, %44 : vector<8x256xf32>
    %c8 = arith.constant 8 : index
    %c0_30 = arith.constant 0 : index
    %c0_31 = arith.constant 0 : index
    %46 = vector.load %arg4[%c8, %c0_30, %c0_31] : memref<9x8x4xbf16, #tpu.memory_space<vmem>>, vector<1x8x4xbf16>
    %47 = vector.shape_cast %46 : vector<1x8x4xbf16> to vector<8x4xbf16>
    %48 = vector.extract_strided_slice %4 {offsets = [0, 34], sizes = [4, 256], strides = [1, 1]} : vector<4x384xbf16> to vector<4x256xbf16>
    %cst_32 = arith.constant dense<0.000000e+00> : vector<8x256xf32>
    %49 = tpu.matmul %47, %48, %cst_32 {dimension_numbers = #tpu.dot_dimension_numbers<[1], [0], [0], [1], [0, 0, 1, 1], [], []>} : vector<8x4xbf16>, vector<4x256xbf16>, vector<8x256xf32> -> vector<8x256xf32>
    %50 = arith.addf %45, %49 : vector<8x256xf32>
    %c0_33 = arith.constant 0 : index
    %c0_34 = arith.constant 0 : index
    %51 = vector.load %arg5[%c0_33, %c0_34] : memref<8x1xf32, #tpu.memory_space<vmem>>, vector<8x1xf32>
    %52 = vector.broadcast %51 : vector<8x1xf32> to vector<8x256xf32>
    %53 = arith.addf %50, %52 : vector<8x256xf32>
    %54 = arith.truncf %53 : vector<8x256xf32> to vector<8x256xbf16>
    %c0_35 = arith.constant 0 : index
    %c0_36 = arith.constant 0 : index
    %c0_37 = arith.constant 0 : index
    %55 = vector.load %arg7[%c0_35, %c0_36, %c0_37] : memref<1x8x256xbf16, #tpu.memory_space<vmem>>, vector<1x8x256xbf16>
    %56 = vector.shape_cast %55 : vector<1x8x256xbf16> to vector<8x256xbf16>
    %57 = vector.shape_cast %54 : vector<8x256xbf16> to vector<1x8x256xbf16>
    tpu.vector_store %arg7[%c0_35, %c0_36, %c0_37], %57 {strides = array<i32>} : memref<1x8x256xbf16, #tpu.memory_space<vmem>>, vector<1x8x256xbf16>,
    %c0_38 = arith.constant 0 : index
    %c0_39 = arith.constant 0 : index
    %58 = vector.load %arg6[%c0_38, %c0_39] : memref<1x256xf32, #tpu.memory_space<vmem>>, vector<1x256xf32>
    %59 = vector.broadcast %58 : vector<1x256xf32> to vector<8x256xf32>
    %60 = arith.mulf %53, %59 : vector<8x256xf32>
    %cst_40 = arith.constant dense<0.000000e+00> : vector<8xf32>
    %61 = vector.multi_reduction <add>, %60, %cst_40 [1] : vector<8x256xf32> to vector<8xf32>
    %62 = vector.shape_cast %61 : vector<8xf32> to vector<8x1xf32>
    %c0_41 = arith.constant 0 : index
    %c0_42 = arith.constant 0 : index
    %c0_43 = arith.constant 0 : index
    %c0_44 = arith.constant 0 : index
    %63 = vector.load %arg8[%c0_41, %c0_42, %c0_43, %c0_44] : memref<1x1x8x1xf32, #tpu.memory_space<vmem>>, vector<1x1x8x1xf32>
    %64 = vector.shape_cast %63 : vector<1x1x8x1xf32> to vector<8x1xf32>
    %65 = vector.shape_cast %62 : vector<8x1xf32> to vector<1x1x8x1xf32>
    tpu.vector_store %arg8[%c0_41, %c0_42, %c0_43, %c0_44], %65 {strides = array<i32>} : memref<1x1x8x1xf32, #tpu.memory_space<vmem>>, vector<1x1x8x1xf32>,
    %66 = arith.mulf %60, %60 : vector<8x256xf32>
    %cst_45 = arith.constant dense<0.000000e+00> : vector<8xf32>
    %67 = vector.multi_reduction <add>, %66, %cst_45 [1] : vector<8x256xf32> to vector<8xf32>
    %68 = vector.shape_cast %67 : vector<8xf32> to vector<8x1xf32>
    %c0_46 = arith.constant 0 : index
    %c0_47 = arith.constant 0 : index
    %c0_48 = arith.constant 0 : index
    %c0_49 = arith.constant 0 : index
    %69 = vector.load %arg9[%c0_46, %c0_47, %c0_48, %c0_49] : memref<1x1x8x1xf32, #tpu.memory_space<vmem>>, vector<1x1x8x1xf32>
    %70 = vector.shape_cast %69 : vector<1x1x8x1xf32> to vector<8x1xf32>
    %71 = vector.shape_cast %68 : vector<8x1xf32> to vector<1x1x8x1xf32>
    tpu.vector_store %arg9[%c0_46, %c0_47, %c0_48, %c0_49], %71 {strides = array<i32>} : memref<1x1x8x1xf32, #tpu.memory_space<vmem>>, vector<1x1x8x1xf32>,
    return
  }
  func.func @transform_0(%arg0: i32, %arg1: i32) -> (i32, i32, i32) {
    %c0_i32 = arith.constant 0 : i32
    %c0_i32_0 = arith.constant 0 : i32
    return %arg0, %c0_i32, %arg1 : i32, i32, i32
  }
  func.func @transform_1(%arg0: i32, %arg1: i32) -> (i32, i32, i32) {
    %c1_i32 = arith.constant 1 : i32
    %0 = arith.addi %arg1, %c1_i32 : i32
    %c2_i32 = arith.constant 2 : i32
    %1 = arith.muli %0, %c2_i32 : i32
    %c0_i32 = arith.constant 0 : i32
    %c0_i32_0 = arith.constant 0 : i32
    return %arg0, %c0_i32, %1 : i32, i32, i32
  }
  func.func @transform_2(%arg0: i32, %arg1: i32) -> (i32, i32, i32) {
    %c0_i32 = arith.constant 0 : i32
    %c0_i32_0 = arith.constant 0 : i32
    %c0_i32_1 = arith.constant 0 : i32
    %c0_i32_2 = arith.constant 0 : i32
    return %c0_i32, %c0_i32_0, %c0_i32_1 : i32, i32, i32
  }
  func.func @transform_3(%arg0: i32, %arg1: i32) -> (i32, i32) {
    %c0_i32 = arith.constant 0 : i32
    %c0_i32_0 = arith.constant 0 : i32
    %c0_i32_1 = arith.constant 0 : i32
    return %c0_i32, %c0_i32_0 : i32, i32
  }
  func.func @transform_4(%arg0: i32, %arg1: i32) -> (i32, i32) {
    %c0_i32 = arith.constant 0 : i32
    %c0_i32_0 = arith.constant 0 : i32
    return %c0_i32, %arg1 : i32, i32
  }
  func.func @transform_5(%arg0: i32, %arg1: i32) -> (i32, i32, i32) {
    %c0_i32 = arith.constant 0 : i32
    %c0_i32_0 = arith.constant 0 : i32
    return %arg0, %c0_i32, %arg1 : i32, i32, i32
  }
  func.func @transform_6(%arg0: i32, %arg1: i32) -> (i32, i32, i32, i32) {
    %c0_i32 = arith.constant 0 : i32
    %c0_i32_0 = arith.constant 0 : i32
    %c0_i32_1 = arith.constant 0 : i32
    return %arg0, %arg1, %c0_i32, %c0_i32_0 : i32, i32, i32, i32
  }
  func.func @transform_7(%arg0: i32, %arg1: i32) -> (i32, i32, i32, i32) {
    %c0_i32 = arith.constant 0 : i32
    %c0_i32_0 = arith.constant 0 : i32
    %c0_i32_1 = arith.constant 0 : i32
    return %arg0, %arg1, %c0_i32, %c0_i32_0 : i32, i32, i32, i32
  }
}

module attributes {stable_mosaic.version = 11 : i64} {
  func.func @bn_lrelu_kernel(%arg0: i32, %arg1: i32, %arg2: memref<1x8x256xbf16, #tpu.memory_space<vmem>>, %arg3: memref<8x1xf32, #tpu.memory_space<vmem>>, %arg4: memref<8x1xf32, #tpu.memory_space<vmem>>, %arg5: memref<1x8x256xbf16, #tpu.memory_space<vmem>>) attributes {dimension_semantics = [#tpu.dimension_semantics<parallel>, #tpu.dimension_semantics<parallel>], iteration_bounds = array<i64: 2, 1>, scalar_prefetch = 0 : i64, scratch_operands = 0 : i64, tpu.core_type = #tpu.core_type<tc>, window_params = [{transform_indices = @transform_0, window_bounds = array<i64: 1, 8, 256>}, {pipeline_mode = #tpu.pipeline_mode<synchronous>, transform_indices = @transform_1, window_bounds = array<i64: 8, 1>}, {pipeline_mode = #tpu.pipeline_mode<synchronous>, transform_indices = @transform_2, window_bounds = array<i64: 8, 1>}, {transform_indices = @transform_3, window_bounds = array<i64: 1, 8, 256>}]} {
    %c0 = arith.constant 0 : index
    %c0_0 = arith.constant 0 : index
    %c0_1 = arith.constant 0 : index
    %0 = vector.load %arg2[%c0, %c0_0, %c0_1] : memref<1x8x256xbf16, #tpu.memory_space<vmem>>, vector<1x8x256xbf16>
    %1 = vector.shape_cast %0 : vector<1x8x256xbf16> to vector<8x256xbf16>
    %2 = arith.extf %1 : vector<8x256xbf16> to vector<8x256xf32>
    %c0_2 = arith.constant 0 : index
    %c0_3 = arith.constant 0 : index
    %3 = vector.load %arg3[%c0_2, %c0_3] : memref<8x1xf32, #tpu.memory_space<vmem>>, vector<8x1xf32>
    %4 = vector.broadcast %3 : vector<8x1xf32> to vector<8x256xf32>
    %5 = arith.mulf %2, %4 : vector<8x256xf32>
    %c0_4 = arith.constant 0 : index
    %c0_5 = arith.constant 0 : index
    %6 = vector.load %arg4[%c0_4, %c0_5] : memref<8x1xf32, #tpu.memory_space<vmem>>, vector<8x1xf32>
    %7 = vector.broadcast %6 : vector<8x1xf32> to vector<8x256xf32>
    %8 = arith.addf %5, %7 : vector<8x256xf32>
    %cst = arith.constant 0.000000e+00 : f32
    %9 = vector.broadcast %cst : f32 to vector<8x256xf32>
    %10 = arith.cmpf ogt, %8, %9 : vector<8x256xf32>
    %cst_6 = arith.constant 2.000000e-01 : f32
    %11 = vector.broadcast %cst_6 : f32 to vector<8x256xf32>
    %12 = arith.mulf %11, %8 : vector<8x256xf32>
    %13 = arith.select %10, %8, %12 : vector<8x256xi1>, vector<8x256xf32>
    %14 = arith.truncf %13 : vector<8x256xf32> to vector<8x256xbf16>
    %c0_7 = arith.constant 0 : index
    %c0_8 = arith.constant 0 : index
    %c0_9 = arith.constant 0 : index
    %15 = vector.load %arg5[%c0_7, %c0_8, %c0_9] : memref<1x8x256xbf16, #tpu.memory_space<vmem>>, vector<1x8x256xbf16>
    %16 = vector.shape_cast %15 : vector<1x8x256xbf16> to vector<8x256xbf16>
    %17 = vector.shape_cast %14 : vector<8x256xbf16> to vector<1x8x256xbf16>
    tpu.vector_store %arg5[%c0_7, %c0_8, %c0_9], %17 {strides = array<i32>} : memref<1x8x256xbf16, #tpu.memory_space<vmem>>, vector<1x8x256xbf16>,
    return
  }
  func.func @transform_0(%arg0: i32, %arg1: i32) -> (i32, i32, i32) {
    %c0_i32 = arith.constant 0 : i32
    %c0_i32_0 = arith.constant 0 : i32
    return %arg0, %c0_i32, %arg1 : i32, i32, i32
  }
  func.func @transform_1(%arg0: i32, %arg1: i32) -> (i32, i32) {
    %c0_i32 = arith.constant 0 : i32
    %c0_i32_0 = arith.constant 0 : i32
    %c0_i32_1 = arith.constant 0 : i32
    return %c0_i32, %c0_i32_0 : i32, i32
  }
  func.func @transform_2(%arg0: i32, %arg1: i32) -> (i32, i32) {
    %c0_i32 = arith.constant 0 : i32
    %c0_i32_0 = arith.constant 0 : i32
    %c0_i32_1 = arith.constant 0 : i32
    return %c0_i32, %c0_i32_0 : i32, i32
  }
  func.func @transform_3(%arg0: i32, %arg1: i32) -> (i32, i32, i32) {
    %c0_i32 = arith.constant 0 : i32
    %c0_i32_0 = arith.constant 0 : i32
    return %arg0, %c0_i32, %arg1 : i32, i32, i32
  }
}

</mosaic_0001>

<bundles_post_ra>
// kernel: conv_block_forward.3
= control target key start
LH: loop header
LB: loop body
LE: loop exit
PB: predicated region body
PF: predicated region fallthrough
CT: control target
= control target key end

     0   :  { %s417_s12 = smov 0   ;;  %s419_s13 = smov 0   ;;  %s456_s0 = inlined_call_operand.vmem [shape: bf16[2,8,256], index: 0, kind: input, shape index: {}, may-alias: {0,3}]   ;;  %s457_s1 = inlined_call_operand.vmem [shape: f32[8,1], index: 1, kind: input, shape index: {}]   ;;  %s458_s2 = inlined_call_operand.vmem [shape: f32[8,1], index: 2, kind: input, shape index: {}]   ;;  %s459_s3 = inlined_call_operand.vmem [shape: bf16[2,8,256], index: 3, kind: output, shape index: {}, may-alias: {0,3}]  }
   0x1   :  { %s421_s14 = smov 0  }
   0x2 LB: > { %s25_s15 = sadd.s32 1, %s390_s13  ;;  %p335_p0 = scmp.ge.s32.totalorder %s394_s14, 1  ;;  %s394_s14 = sphi %s421_s14, %s13_s14   ;;  %s390_s13 = sphi %s419_s13, %s461_s13   ;;  %s386_s12 = sphi %s417_s12, %s460_s12  }
   0x3   : > { %p27_p1 = scmp.ge.s32.totalorder %s25_s15, 2  ;;  %p158_p2 = scmp.lt.s32.totalorder %s394_s14, 3 }
   0x5   : > { %s463_s15 = smov (%p27_p1, %s25_s15), 0  ;;  %p159_p3 = pnand %p335_p0, %p158_p2 }
   0x6   : > { %v213_v0 = vld [vmem:[%s457_s1] sm:$0xff] (!%p159_p3)  ;;  %v396_v1 = vmov (!%p159_p3), 0   ;;  %p191_p4 = scmp.lt.s32.totalorder (!%p159_p3), %s386_s12, 1 }
   0x7   : > { %162 = sbr.rel (%p159_p3) target bundleno = 148 (0x94), region = 32  ;;  %371 = vset.pattern.permute.xlu0 (!%p159_p3), %v396_v1  ;;  %v221_v2 = vld [vmem:[%s458_s2] sm:$0xff] (!%p159_p3) }
   0x8   : > { %216 = vperm.xlu0 (!%p159_p3), %371, %v213_v0  }
   0xc   : > { %224 = vperm.xlu0 (!%p159_p3), %371, %v221_v2  }
   0xe   : > { %s465_s12 = smov (!%p191_p4, %s386_s12), 1 }
   0xf   : > { %s343_s20 = sshll.u32 %s465_s12, 3 }
  0x10   : > { %s198_s23 = scalar_lea.vmem %s456_s0, %s343_s20  ;;  %s208_s26 = scalar_lea.vmem %s459_s3, %s343_s20 }
  0x11   : > { %v210_v3 = vld [vmem:[%s198_s23] sm:$0xff] }
  0x12   : > { %v211_v4 = vunpack.c.l.bf16 %v210_v3  ;;  %v212_v5 = vunpack.c.h.bf16 %v210_v3 }
  0x87   : > { %v217_v6 = vpop.permute.xlu0 %216 }
  0x88   : > { %v219_v7 = vmul.f32 %v217_v6, %v211_v4  ;;  %v220_v8 = vmul.f32 %v217_v6, %v212_v5 }
  0x8b   : > { %v225_v9 = vpop.permute.xlu0 %224 }
  0x8c   : > { %v227_v10 = vadd.f32 %v225_v9, %v219_v7  ;;  %v228_v11 = vadd.f32 %v225_v9, %v220_v8 }
  0x8e   : > { %vm229_vm0 = vcmp.gt.f32.partialorder %v227_v10, 0.0  ;;  %vm230_vm1 = vcmp.gt.f32.partialorder %v228_v11, 0.0  ;;  %v231_v12 = vmul.f32 0.2, %v227_v10  ;;  %v232_v13 = vmul.f32 0.2, %v228_v11 }
  0x90   : > { %v233_v14 = vsel %vm229_vm0, %v227_v10, %v231_v12  ;;  %v234_v15 = vsel %vm230_vm1, %v228_v11, %v232_v13 }
  0x91   : > { %v345_v16 = vpack.c.bf16 %v234_v15, %v233_v14 }
  0x93   : > { %243 = vst [vmem:[%s208_s26] sm:$0xff] %v345_v16 }
  0x94 PF: > { %s13_s14 = sadd.s32 1, %s394_s14   ;;  %s460_s12 = smov %s390_s13 }
  0x95   : > { %p10_p5 = scmp.ge.s32.totalorder %s13_s14, 4   ;;  %s461_s13 = smov %s463_s15 }
  0x97   :  { %12 = sbr.rel (!%p10_p5) target bundleno = 2 (0x2), region = 62 }

// kernel: conv_block_forward.2
= control target key start
LH: loop header
LB: loop body
LE: loop exit
PB: predicated region body
PF: predicated region fallthrough
CT: control target
= control target key end

     0   :  { %s1404_s24 = smov 0   ;;  %s1406_s25 = smov 0   ;;  %s1520_s0 = inlined_call_operand.vmem [shape: bf16[2,4,384], index: 0, kind: input, shape index: {}, may-alias: {0,1}]   ;;  %s1521_s1 = inlined_call_operand.vmem [shape: bf16[2,4,384], index: 1, kind: input, shape index: {}, may-alias: {0,1}]   ;;  %s1522_s2 = inlined_call_operand.vmem [shape: bf16[9,8,4], index: 2, kind: input, shape index: {}]   ;;  %s1523_s3 = inlined_call_operand.vmem [shape: f32[8,1], index: 3, kind: input, shape index: {}]   ;;  %s1524_s4 = inlined_call_operand.vmem [shape: f32[1,256], index: 4, kind: input, shape index: {}]   ;;  %s1525_s5 = inlined_call_operand.vmem [shape: bf16[2,8,256], index: 5, kind: output, shape index: {0}]   ;;  %s1526_s6 = inlined_call_operand.vmem [shape: f32[2,1,8,1], index: 6, kind: output, shape index: {1}]   ;;  %s1527_s7 = inlined_call_operand.vmem [shape: f32[2,1,8,1], index: 7, kind: output, shape index: {2}]  }
   0x1   :  { %s1408_s26 = smov 0  }
   0x2 LB: > { %s30_s27 = sadd.s32 1, %s1349_s25  ;;  %p1253_p0 = scmp.ge.s32.totalorder %s1353_s26, 1  ;;  %s1353_s26 = sphi %s1408_s26, %s18_s26   ;;  %s1349_s25 = sphi %s1406_s25, %s1529_s25   ;;  %s1345_s24 = sphi %s1404_s24, %s1528_s24  }
   0x3   : > { %p32_p1 = scmp.ge.s32.totalorder %s30_s27, 2  ;;  %p308_p2 = scmp.lt.s32.totalorder %s1353_s26, 3 }
   0x5   : > { %s1531_s27 = smov (%p32_p1, %s30_s27), 0  ;;  %p309_p3 = pnand %p1253_p0, %p308_p2 }
   0x6   : > { %p385_p4 = scmp.lt.s32.totalorder (!%p309_p3), %s1345_s24, 1  ;;  %v1355_v0 = vmov (!%p309_p3), 0   ;;  %vm468_vm0 = vcmask (!%p309_p3), 1041408   ;;  %s1356_s13 = smov (!%p309_p3), 126   ;;  %v451_v5 = vld [vmem:[%s1522_s2] sm:$0xf] (!%p309_p3) }
   0x7   : > { %312 = sbr.rel (%p309_p3) target bundleno = 549 (0x225), region = 40  ;;  %507 = vmatprep.mubr.bf16.mxu0 (!%p309_p3), %v1355_v0  ;;  %557 = vmatprep.mubr.bf16.mxu1 (!%p309_p3), %v1355_v0  ;;  %s1357_s14 = smov (!%p309_p3), 127   ;;  %vm464_vm1 = vcmask (!%p309_p3), 31744   ;;  %v1007_v6 = vld [vmem:[%s1523_s3] sm:$0xff] (!%p309_p3)  ;;  %vm461_vm2 = vcmask (!%p309_p3), 1039360   ;;  %vm574_vm3 = vcmask (!%p309_p3), 1031168  }
   0x8   : > { %1330 = vset.pattern.permute.xlu0 (!%p309_p3), %v1355_v0  ;;  %s1358_s17 = smov (!%p309_p3), 112   ;;  %s1359_s18 = smov (!%p309_p3), 111   ;;  %v1261_v14 = vld [vmem:[%s1522_s2 + $0x4] sm:$0xf] (!%p309_p3)  ;;  %vm637_vm4 = vcmask (!%p309_p3), 916480   ;;  %vm700_vm5 = vcmask (!%p309_p3), 908288  }
   0x9   : > { %s1360_s19 = smov (!%p309_p3), 110   ;;  %s1361_s20 = smov (!%p309_p3), 96   ;;  %v1266_v23 = vld [vmem:[%s1522_s2 + $0x8] sm:$0xf] (!%p309_p3)  ;;  %v1269_v28 = vld [vmem:[%s1522_s2 + $0xc] sm:$0xf] (!%p309_p3) }
   0xa   : > { %s1362_s21 = smov (!%p309_p3), 95   ;;  %s1363_s22 = smov (!%p309_p3), 94   ;;  %v1272_v34 = vld [vmem:[%s1522_s2 + $0x10] sm:$0xf] (!%p309_p3)  ;;  %vm763_vm6 = vcmask (!%p309_p3), 900096   ;;  %vm826_vm7 = vcmask (!%p309_p3), 785408  }
   0xb   : > { %v1275_v42 = vld [vmem:[%s1522_s2 + $0x14] sm:$0xf] (!%p309_p3)  ;;  %v1278_v48 = vld [vmem:[%s1522_s2 + $0x18] sm:$0xf] (!%p309_p3)  ;;  %vm889_vm8 = vcmask (!%p309_p3), 777216   ;;  %vm952_vm9 = vcmask (!%p309_p3), 769024  }
   0xc   : > { %v1281_v56 = vld [vmem:[%s1522_s2 + $0x1c] sm:$0xf] (!%p309_p3)  ;;  %v1284_v62 = vld [vmem:[%s1522_s2 + $0x20] sm:$0xf] (!%p309_p3)  ;;  %vm1041_vm10 = vcmask (!%p309_p3), 7168  }
   0xe   : > { %s1533_s24 = smov (!%p385_p4, %s1345_s24), 1 }
   0xf   : > { %s1294_s28 = smul.u32 6, %s1533_s24 }
  0x11   : > { %s392_s8 = scalar_lea.vmem %s1520_s0, %s1294_s28  ;;  %s1291_s9 = sadd.s32 4, %s1294_s28 }
  0x12   : > { %v1260_v1 = vld.sshfl [vmem:[%s392_s8] sm:$0x33 pattern:$0x76325410]  ;;  %s407_s12 = scalar_lea.vmem %s1521_s1, %s1291_s9  ;;  %s1292_s28 = sshll.u32 %s1533_s24, 3 }
  0x13   : > { %568 = vrot.lane.b32.xlu1 %v1260_v1, %s1356_s13  ;;  %455 = vrot.lane.b32.xlu0 %v1260_v1, %s1357_s14  ;;  %v450_v2 = vcombine.high %v1260_v1, %v1260_v1  ;;  %v520_v3 = vsel %vm468_vm0, %v1260_v1, 0  ;;  %v441_v4 = vld [vmem:[%s407_s12] sm:$0x3]  ;;  %s423_s8 = scalar_lea.vmem %s1525_s5, %s1292_s28  ;;  %s431_s10 = scalar_lea.vmem %s1526_s6, %s1292_s28 }
  0x15   : > { %1264 = vmatprep.subr.msk.bf16.mxu1 %vm468_vm0, %v450_v2 }
  0x16   : > { %526 = vmatpush1.bf16.msra.mxu1 %v520_v3 }
  0x17   : > { %459 = vrot.lane.b32.xlu1 %v441_v4, %s1357_s14  ;;  %457 = vrot.lane.b32.xlu0 %v450_v2, %s1357_s14 }
  0x19   : > { %1265 = vmatmul.mubr.msk.bf16.vlgmr.msra.gmra.mrb[0].mxu1 %vm464_vm1, %v451_v5 }
  0x1a   : > { %681 = vmatprep.mubr.bf16.mxu1 %v1355_v0 }
  0x1b   : > { %572 = vrot.lane.b32.xlu1 %v441_v4, %s1356_s13  ;;  %570 = vrot.lane.b32.xlu0 %v450_v2, %s1356_s13  ;;  %s438_s13 = scalar_lea.vmem %s1527_s7, %s1292_s28 }
  0x1f   : > { %633 = vrot.lane.b32.xlu1 %v450_v2, %s1358_s17  ;;  %631 = vrot.lane.b32.xlu0 %v1260_v1, %s1358_s17 }
  0x23   : > { %694 = vrot.lane.b32.xlu1 %v1260_v1, %s1359_s18  ;;  %635 = vrot.lane.b32.xlu0 %v441_v4, %s1358_s17 }
  0x27   : > { %698 = vrot.lane.b32.xlu1 %v441_v4, %s1359_s18  ;;  %696 = vrot.lane.b32.xlu0 %v450_v2, %s1359_s18 }
  0x2b   : > { %759 = vrot.lane.b32.xlu1 %v450_v2, %s1360_s19  ;;  %757 = vrot.lane.b32.xlu0 %v1260_v1, %s1360_s19 }
  0x2f   : > { %820 = vrot.lane.b32.xlu1 %v1260_v1, %s1361_s20  ;;  %761 = vrot.lane.b32.xlu0 %v441_v4, %s1360_s19 }
  0x33   : > { %824 = vrot.lane.b32.xlu1 %v441_v4, %s1361_s20  ;;  %822 = vrot.lane.b32.xlu0 %v450_v2, %s1361_s20 }
  0x37   : > { %885 = vrot.lane.b32.xlu1 %v450_v2, %s1362_s21  ;;  %883 = vrot.lane.b32.xlu0 %v1260_v1, %s1362_s21 }
  0x3b   : > { %946 = vrot.lane.b32.xlu1 %v1260_v1, %s1363_s22  ;;  %887 = vrot.lane.b32.xlu0 %v441_v4, %s1362_s21 }
  0x3f   : > { %950 = vrot.lane.b32.xlu1 %v441_v4, %s1363_s22  ;;  %948 = vrot.lane.b32.xlu0 %v450_v2, %s1363_s22 }
  0x43   : > { %1010 = vperm.xlu0 %1330, %v1007_v6  }
  0x85   : > { %v569_v7 = vpop.permute.xlu1 %568  ;;  %v456_v8 = vpop.permute.xlu0 %455 }
  0x89   : > { %v460_v9 = vpop.permute.xlu1 %459  ;;  %v458_v10 = vpop.permute.xlu0 %457 }
  0x8a   : > { %v463_v11 = vsel %vm461_vm2, %v458_v10, %v460_v9  ;;  %v462_v12 = vsel %vm461_vm2, %v456_v8, %v458_v10 }
  0x8b   : > { %1262 = vmatprep.subr.msk.bf16.mxu0 %vm468_vm0, %v463_v11  ;;  %v470_v13 = vsel %vm468_vm0, %v462_v12, 0 }
  0x8c   : > { %476 = vmatpush1.bf16.msra.mxu0 %v470_v13 }
  0x8d   : > { %v573_v15 = vpop.permute.xlu1 %572  ;;  %v571_v16 = vpop.permute.xlu0 %570 }
  0x8e   : > { %v575_v17 = vsel %vm574_vm3, %v569_v7, %v571_v16  ;;  %v576_v18 = vsel %vm574_vm3, %v571_v16, %v573_v15 }
  0x8f   : > { %v581_v19 = vsel %vm468_vm0, %v575_v17, 0  ;;  %1267 = vmatprep.subr.msk.bf16.mxu0 %vm468_vm0, %v576_v18  ;;  %1263 = vmatmul.mubr.msk.bf16.vlgmr.msra.gmra.mrb[0].mxu0 %vm464_vm1, %v1261_v14 }
  0x90   : > { %587 = vmatpush1.bf16.msra.mxu0 %v581_v19  ;;  %618 = vmatprep.mubr.bf16.mxu0 %v1355_v0 }
  0x91   : > { %v634_v20 = vpop.permute.xlu1 %633  ;;  %v632_v21 = vpop.permute.xlu0 %631 }
  0x92   : > { %v638_v22 = vsel %vm637_vm4, %v632_v21, %v634_v20 }
  0x93   : > { %v644_v27 = vsel %vm468_vm0, %v638_v22, 0 }
  0x95   : > { %v695_v24 = vpop.permute.xlu1 %694  ;;  %v636_v25 = vpop.permute.xlu0 %635 }
  0x96   : > { %v639_v26 = vsel %vm637_vm4, %v634_v20, %v636_v25 }
  0x97   : > { %1270 = vmatprep.subr.msk.bf16.mxu1 %vm468_vm0, %v639_v26  ;;  %1268 = vmatmul.mubr.msk.bf16.vlgmr.msra.gmra.mrb[4].mxu0 %vm464_vm1, %v1266_v23 }
  0x98   : > { %650 = vmatpush1.bf16.msra.mxu1 %v644_v27  ;;  %744 = vmatprep.mubr.bf16.mxu0 %v1355_v0 }
  0x99   : > { %v699_v29 = vpop.permute.xlu1 %698  ;;  %v697_v30 = vpop.permute.xlu0 %696 }
  0x9a   : > { %v701_v31 = vsel %vm700_vm5, %v695_v24, %v697_v30  ;;  %v702_v32 = vsel %vm700_vm5, %v697_v30, %v699_v29 }
  0x9b   : > { %v707_v33 = vsel %vm468_vm0, %v701_v31, 0  ;;  %1273 = vmatprep.subr.msk.bf16.mxu0 %vm468_vm0, %v702_v32  ;;  %1271 = vmatmul.mubr.msk.bf16.vlgmr.msra.gmra.mrb[4].mxu1 %vm464_vm1, %v1269_v28 }
  0x9c   : > { %713 = vmatpush1.bf16.msra.mxu0 %v707_v33  ;;  %807 = vmatprep.mubr.bf16.mxu1 %v1355_v0 }
  0x9d   : > { %v760_v35 = vpop.permute.xlu1 %759  ;;  %v758_v36 = vpop.permute.xlu0 %757 }
  0x9e   : > { %v764_v37 = vsel %vm763_vm6, %v758_v36, %v760_v35  ;;  %v1026_v36 = vlaneseq }
  0x9f   : > { %1274 = vmatmul.mubr.msk.bf16.vlgmr.msra.gmra.mrb[8].mxu0 %vm464_vm1, %v1272_v34  ;;  %v770_v41 = vsel %vm468_vm0, %v764_v37, 0 }
  0xa0   : > { %870 = vmatprep.mubr.bf16.mxu0 %v1355_v0 }
  0xa1   : > { %v821_v38 = vpop.permute.xlu1 %820  ;;  %v762_v39 = vpop.permute.xlu0 %761 }
  0xa2   : > { %v765_v40 = vsel %vm763_vm6, %v760_v35, %v762_v39 }
  0xa3   : > { %1276 = vmatprep.subr.msk.bf16.mxu1 %vm468_vm0, %v765_v40  ;;  %v1027_v40 = vshrl.u32 %v1026_v36, 7 }
  0xa4   : > { %776 = vmatpush1.bf16.msra.mxu1 %v770_v41 }
  0xa5   : > { %v825_v43 = vpop.permute.xlu1 %824  ;;  %v823_v44 = vpop.permute.xlu0 %822 }
  0xa6   : > { %v827_v45 = vsel %vm826_vm7, %v821_v38, %v823_v44  ;;  %v828_v46 = vsel %vm826_vm7, %v823_v44, %v825_v43  ;;  %v1028_v44 = vsub.s32 0, %v1027_v40 }
  0xa7   : > { %v833_v47 = vsel %vm468_vm0, %v827_v45, 0  ;;  %1277 = vmatmul.mubr.msk.bf16.vlgmr.msra.gmra.mrb[8].mxu1 %vm464_vm1, %v1275_v42  ;;  %1279 = vmatprep.subr.msk.bf16.mxu0 %vm468_vm0, %v828_v46 }
  0xa8   : > { %839 = vmatpush1.bf16.msra.mxu0 %v833_v47  ;;  %933 = vmatprep.mubr.bf16.mxu1 %v1355_v0  ;;  %v1024_v47 = vld [vmem:[%s1524_s4] sm:$0x3] }
  0xa9   : > { %v886_v49 = vpop.permute.xlu1 %885  ;;  %v884_v50 = vpop.permute.xlu0 %883 }
  0xaa   : > { %v890_v51 = vsel %vm889_vm8, %v884_v50, %v886_v49 }
  0xab   : > { %1280 = vmatmul.mubr.msk.bf16.vlgmr.msra.gmra.mrb[12].mxu0 %vm464_vm1, %v1278_v48  ;;  %v896_v55 = vsel %vm468_vm0, %v890_v51, 0  ;;  %v1032_v48 = vsub.s32 1, %v1027_v40 }
  0xac   : > { %996 = vmatprep.mubr.bf16.mxu0 %v1355_v0 }
  0xad   : > { %v947_v52 = vpop.permute.xlu1 %946  ;;  %v888_v53 = vpop.permute.xlu0 %887 }
  0xae   : > { %v891_v54 = vsel %vm889_vm8, %v886_v49, %v888_v53 }
  0xaf   : > { %1282 = vmatprep.subr.msk.bf16.mxu1 %vm468_vm0, %v891_v54  ;;  %v1029_v54 = vrot.slane %v1024_v47, %v1028_v44 }
  0xb0   : > { %902 = vmatpush1.bf16.msra.mxu1 %v896_v55 }
  0xb1   : > { %v951_v57 = vpop.permute.xlu1 %950  ;;  %v949_v58 = vpop.permute.xlu0 %948 }
  0xb2   : > { %v953_v59 = vsel %vm952_vm9, %v947_v52, %v949_v58  ;;  %v954_v60 = vsel %vm952_vm9, %v949_v58, %v951_v57  ;;  %v1033_v57 = vrot.slane %v1024_v47, %v1032_v48 }
  0xb3   : > { %v959_v61 = vsel %vm468_vm0, %v953_v59, 0  ;;  %1283 = vmatmul.mubr.msk.bf16.vlgmr.msra.gmra.mrb[12].mxu1 %vm464_vm1, %v1281_v56  ;;  %1285 = vmatprep.subr.msk.bf16.mxu0 %vm468_vm0, %v954_v60 }
  0xb4   : > { %965 = vmatpush1.bf16.msra.mxu0 %v959_v61 }
  0xb7   : > { %1286 = vmatmul.mubr.msk.bf16.vlgmr.msra.gmra.mrb[16].mxu0 %vm464_vm1, %v1284_v62 }
  0xc2   : > { %v1011_v51 = vpop.permute.xlu0 %1010 }
  0xec   : > { %v559_v63 = vpop.f32.mrb[0].mxu1 }
  0xed   : > { %v561_v0 = vpop.f32.mrb[1].mxu1 }
  0xee   : > { %v563_v1 = vpop.f32.mrb[2].mxu1 }
  0xef   : > { %v564_v2 = vpop.f32.mrb[3].mxu1 }
 0x162   : > { %v509_v3 = vpop.f32.mrb[0].mxu0 }
 0x163   : > { %v511_v4 = vpop.f32.mrb[1].mxu0  ;;  %v560_v5 = vadd.f32 %v559_v63, %v509_v3 }
 0x164   : > { %v513_v6 = vpop.f32.mrb[2].mxu0  ;;  %v562_v7 = vadd.f32 %v561_v0, %v511_v4 }
 0x165   : > { %v514_v8 = vpop.f32.mrb[3].mxu0 }
 0x16a   : > { %v620_v9 = vpop.f32.mrb[4].mxu0 }
 0x16b   : > { %v627_v10 = vadd.f32 %v620_v9, %v560_v5  ;;  %v622_v11 = vpop.f32.mrb[5].mxu0 }
 0x16c   : > { %v628_v12 = vadd.f32 %v622_v11, %v562_v7  ;;  %v624_v13 = vpop.f32.mrb[6].mxu0 }
 0x16d   : > { %v625_v14 = vpop.f32.mrb[7].mxu0 }
 0x16e   : > { %v683_v15 = vpop.f32.mrb[4].mxu1 }
 0x16f   : > { %v690_v16 = vadd.f32 %v683_v15, %v627_v10  ;;  %v685_v17 = vpop.f32.mrb[5].mxu1 }
 0x170   : > { %v691_v18 = vadd.f32 %v685_v17, %v628_v12  ;;  %v687_v19 = vpop.f32.mrb[6].mxu1 }
 0x171   : > { %v688_v20 = vpop.f32.mrb[7].mxu1 }
 0x172   : > { %v746_v21 = vpop.f32.mrb[8].mxu0 }
 0x173   : > { %v753_v22 = vadd.f32 %v746_v21, %v690_v16  ;;  %v748_v23 = vpop.f32.mrb[9].mxu0 }
 0x174   : > { %v754_v24 = vadd.f32 %v748_v23, %v691_v18  ;;  %v750_v25 = vpop.f32.mrb[10].mxu0 }
 0x175   : > { %v751_v26 = vpop.f32.mrb[11].mxu0 }
 0x17a   : > { %v809_v27 = vpop.f32.mrb[8].mxu1 }
 0x17b   : > { %v816_v28 = vadd.f32 %v809_v27, %v753_v22  ;;  %v811_v29 = vpop.f32.mrb[9].mxu1 }
 0x17c   : > { %v817_v30 = vadd.f32 %v811_v29, %v754_v24  ;;  %v813_v31 = vpop.f32.mrb[10].mxu1 }
 0x17d   : > { %v814_v32 = vpop.f32.mrb[11].mxu1 }
 0x17e   : > { %v872_v33 = vpop.f32.mrb[12].mxu0 }
 0x17f   : > { %v879_v34 = vadd.f32 %v872_v33, %v816_v28  ;;  %v874_v35 = vpop.f32.mrb[13].mxu0 }
 0x180   : > { %v880_v37 = vadd.f32 %v874_v35, %v817_v30  ;;  %v876_v38 = vpop.f32.mrb[14].mxu0 }
 0x181   : > { %v877_v39 = vpop.f32.mrb[15].mxu0 }
 0x186   : > { %v935_v41 = vpop.f32.mrb[12].mxu1 }
 0x187   : > { %v942_v42 = vadd.f32 %v935_v41, %v879_v34  ;;  %v937_v43 = vpop.f32.mrb[13].mxu1 }
 0x188   : > { %v943_v45 = vadd.f32 %v937_v43, %v880_v37  ;;  %v939_v46 = vpop.f32.mrb[14].mxu1 }
 0x189   : > { %v940_v49 = vpop.f32.mrb[15].mxu1 }
 0x18a   : > { %v998_v50 = vpop.f32.mrb[16].mxu0 }
 0x18b   : > { %v1005_v52 = vadd.f32 %v998_v50, %v942_v42  ;;  %v1000_v53 = vpop.f32.mrb[17].mxu0 }
 0x18c   : > { %v1006_v55 = vadd.f32 %v1000_v53, %v943_v45  ;;  %v1002_v56 = vpop.f32.mrb[18].mxu0 }
 0x18d   : > { %v1013_v58 = vadd.f32 %v1011_v51, %v1005_v52  ;;  %v1003_v59 = vpop.f32.mrb[19].mxu0 }
 0x18e   : > { %v1014_v60 = vadd.f32 %v1011_v51, %v1006_v55 }
 0x18f   : > { %v1036_v61 = vmul.f32 %v1029_v54, %v1013_v58 }
 0x190   : > { %v1293_v62 = vpack.c.bf16 %v1014_v60, %v1013_v58  ;;  %v1037_v63 = vmul.f32 %v1033_v57, %v1014_v60 }
 0x191   : > { %v1043_v0 = vmul.f32 %v1036_v61, %v1036_v61 }
 0x192   : > { %1023 = vst [vmem:[%s423_s8] sm:$0xff] %v1293_v62  ;;  %v1038_v1 = vadd.f32 %v1037_v63, %v1036_v61  ;;  %v1044_v2 = vmul.f32 %v1037_v63, %v1037_v63 }
 0x194   : > { %1039 = vadd.xlane.f32.xlu1 %v1038_v1  ;;  %v1045_v3 = vadd.f32 %v1044_v2, %v1043_v0 }
 0x196   : > { %1046 = vadd.xlane.f32.xlu0 %v1045_v3 }
 0x221   : > { %v1040_v4 = vpop.xlane.xlu1 %1039 }
 0x222   : > { %1042 = vst.msk [vmem:[%s431_s10] sm:$0xff] %vm1041_vm10, %v1040_v4 }
 0x223   : > { %v1047_v5 = vpop.xlane.xlu0 %1046 }
 0x224   : > { %1048 = vst.msk [vmem:[%s438_s13] sm:$0xff] %vm1041_vm10, %v1047_v5 }
 0x225 PF: > { %s18_s26 = sadd.s32 1, %s1353_s26   ;;  %s1528_s24 = smov %s1349_s25 }
 0x226   : > { %p15_p5 = scmp.ge.s32.totalorder %s18_s26, 4   ;;  %s1529_s25 = smov %s1531_s27 }
 0x228   :  { %17 = sbr.rel (!%p15_p5) target bundleno = 2 (0x2), region = 108 }

</bundles_post_ra>
